<compile_context>
chip_gen: v7x
topology: tpu7x:2x2x1
jax: 0.10.0
libtpu: 0.0.40
codegen_flags: <defaults>
</compile_context>

<pallas_src>
import math
import functools

import jax
import jax.numpy as jnp
from jax.experimental import pallas as pl
from jax.experimental.pallas import tpu as pltpu


# ----------------------------------------------------------------------------
# Kernels
# ----------------------------------------------------------------------------
def _kv_projection_kernel(kv_ref, wk_ref, bk_ref, wv_ref, bv_ref,
                          k_out_ref, v_out_ref):
    """K/V projections for one (batch, kv-tile): runs ONCE per kv tile."""
    kv = kv_ref[...]                                       # (tk, H) bf16
    k = jnp.dot(kv, wk_ref[...], preferred_element_type=jnp.float32) + bk_ref[...]
    v = jnp.dot(kv, wv_ref[...], preferred_element_type=jnp.float32) + bv_ref[...]
    k_out_ref[...] = k.astype(k_out_ref.dtype)
    v_out_ref[...] = v.astype(v_out_ref.dtype)


def _attention_kernel(hs_ref, wq_ref, bq_ref, k_ref, v_ref, gamma_ref, beta_ref,
                      *rest,
                      use_mask, add_original_input, ln_eps,
                      skv_valid, tk, mask_kv_tail):
    """Online-softmax cross attention for one (batch, q-tile, kv-tile)."""
    if use_mask:
        mask_ref, out_ref, q_sc, m_sc, l_sc, acc_sc = rest
    else:
        out_ref, q_sc, m_sc, l_sc, acc_sc = rest

    kv_idx = pl.program_id(2)
    num_kv = pl.num_programs(2)

    @pl.when(kv_idx == 0)
    def _():
        # Q projection once per (batch, q-tile); 1/sqrt(H) already folded
        # into wq/bq on the host.  bf16 MXU inputs, f32 accumulate.
        q = jnp.dot(hs_ref[...].astype(jnp.bfloat16), wq_ref[...],
                    preferred_element_type=jnp.float32) + bq_ref[...]
        q_sc[...] = q.astype(jnp.bfloat16)
        m_sc[...] = jnp.full_like(m_sc, -jnp.inf)
        l_sc[...] = jnp.zeros_like(l_sc)
        acc_sc[...] = jnp.zeros_like(acc_sc)

    # Scores (tq, tk): contract on H of both operands (no K transpose copy).
    s = jax.lax.dot_general(
        q_sc[...], k_ref[...],
        dimension_numbers=(((1,), (1,)), ((), ())),
        preferred_element_type=jnp.float32)

    if use_mask:
        # mask > 0 keeps; matches the reference's (1-mask)*finfo.min additive
        # mask.  NOTE: fully-masked rows end up with uniform attention (same
        # degenerate behavior as the reference), not a zero output.
        s = jnp.where(mask_ref[...] > 0, s, jnp.float32(-1e30))
    elif mask_kv_tail:
        # Mask the zero-padded keys in the (padded) last kv tile.
        key_ids = kv_idx * tk + jax.lax.broadcasted_iota(jnp.int32, s.shape, 1)
        s = jnp.where(key_ids < skv_valid, s, jnp.float32(-1e30))

    # Online softmax update (f32).
    m_prev = m_sc[...]
    m_new = jnp.maximum(m_prev, jnp.max(s, axis=-1, keepdims=True))
    alpha = jnp.exp(m_prev - m_new)
    p = jnp.exp(s - m_new)
    l_sc[...] = alpha * l_sc[...] + jnp.sum(p, axis=-1, keepdims=True)
    acc_sc[...] = alpha * acc_sc[...] + jnp.dot(
        p.astype(jnp.bfloat16), v_ref[...], preferred_element_type=jnp.float32)
    m_sc[...] = m_new

    @pl.when(kv_idx == num_kv - 1)
    def _():
        # Approx reciprocal runs on the EUP slot; ~1e-3 rel error on the denom.
        attn = acc_sc[...] * pl.reciprocal(l_sc[...], approx=True)
        if add_original_input:
            x = hs_ref[...] + attn                       # residual in f32
            mean = jnp.mean(x, axis=-1, keepdims=True)
            var = jnp.mean(jnp.square(x - mean), axis=-1, keepdims=True)
            x_hat = (x - mean) * jax.lax.rsqrt(var + ln_eps)
            result = x_hat * gamma_ref[...] + beta_ref[...]
        else:
            result = attn
        out_ref[...] = result.astype(out_ref.dtype)


# ----------------------------------------------------------------------------
# Host-side wrapper
# ----------------------------------------------------------------------------
def _round_up(x, m):
    return ((x + m - 1) // m) * m


def _choose_tile(dim, tile_max):
    """Sublane-aligned tile; full (padded) dim if small, else tile_max.

    tile_max should be a multiple of 128 for MXU alignment on real shapes.
    """
    if dim <= tile_max:
        return _round_up(dim, 8)
    return tile_max


def _vmem_limit_bytes():
    # Leave 25% headroom for compiler scratch / double buffers:
    # 96 MiB on v5e/v6e (128 MiB physical), 48 MiB on v7x (64 MiB physical).
    try:
        cap = pltpu.get_tpu_info().vmem_capacity_bytes
    except Exception:
        cap = 128 * 1024 * 1024
    return (cap // 4) * 3


def cross_attention(hidden_states, key_value_states, params,
                    attention_mask=None, add_original_input=False,
                    *, tq_max=256, tk_max=512, ln_eps=1e-5):
    """Pallas implementation of CrossAttention.forward.

    hidden_states:    (B, Sq, H) float32
    key_value_states: (B, Skv, H) float32
    attention_mask:   optional (B, Sq, Skv) or (B, 1, Skv); 1.0 keep, 0.0 mask
    """
    B, Sq, H = hidden_states.shape
    _, Skv, _ = key_value_states.shape
    use_mask = attention_mask is not None

    # ---- host-side weight prep (once, outside the hot path) ----------------
    inv_sqrt_h = 1.0 / math.sqrt(H)
    wq_t = (params["wq"].T * inv_sqrt_h).astype(jnp.bfloat16)   # (in, out), scaled
    wk_t = params["wk"].T.astype(jnp.bfloat16)
    wv_t = params["wv"].T.astype(jnp.bfloat16)
    bq = (params["bq"] * inv_sqrt_h).reshape(1, H).astype(jnp.float32)
    bk = params["bk"].reshape(1, H).astype(jnp.float32)
    bv = params["bv"].reshape(1, H).astype(jnp.float32)
    gamma = params["gamma"].reshape(1, H).astype(jnp.float32)
    beta = params["beta"].reshape(1, H).astype(jnp.float32)

    # ---- tiling & padding ---------------------------------------------------
    tq = _choose_tile(Sq, tq_max)
    tk = _choose_tile(Skv, tk_max)
    if use_mask and tk % 128 != 0:
        # The mask block's lane dim must be 128-aligned or the full dim;
        # fall back to a single kv tile when tk is not a lane multiple.
        tk = _round_up(Skv, 8)
    sq_pad = _round_up(Sq, tq)
    skv_pad = _round_up(Skv, tk)
    nq, nkv = sq_pad // tq, skv_pad // tk

    hs = hidden_states
    if sq_pad != Sq:
        hs = jnp.pad(hs, ((0, 0), (0, sq_pad - Sq), (0, 0)))
    kv = key_value_states.astype(jnp.bfloat16)        # halve KV DMA bytes
    if skv_pad != Skv:
        kv = jnp.pad(kv, ((0, 0), (0, skv_pad - Skv), (0, 0)))

    vmem_limit = _vmem_limit_bytes()

    # ---- Stage 1: K/V projection (runs once per kv tile, not per q tile) ----
    kv_map = lambda b, i: (b, i, 0)
    w_map2 = lambda b, i: (0, 0)
    k_proj, v_proj = pl.pallas_call(
        _kv_projection_kernel,
        out_shape=(jax.ShapeDtypeStruct((B, skv_pad, H), jnp.bfloat16),
                   jax.ShapeDtypeStruct((B, skv_pad, H), jnp.bfloat16)),
        grid_spec=pltpu.PrefetchScalarGridSpec(
            num_scalar_prefetch=0,
            grid=(B, nkv),
            in_specs=[
                pl.BlockSpec((None, tk, H), kv_map),   # key_value_states tile
                pl.BlockSpec((H, H), w_map2),          # Wk^T
                pl.BlockSpec((1, H), w_map2),          # bk
                pl.BlockSpec((H, H), w_map2),          # Wv^T
                pl.BlockSpec((1, H), w_map2),          # bv
            ],
            out_specs=(pl.BlockSpec((None, tk, H), kv_map),
                       pl.BlockSpec((None, tk, H), kv_map)),
        ),
        compiler_params=pltpu.CompilerParams(
            dimension_semantics=("parallel", "parallel"),
            vmem_limit_bytes=vmem_limit),
        cost_estimate=pl.CostEstimate(
            flops=4 * B * skv_pad * H * H,
            transcendentals=0,
            bytes_accessed=(2 * B * skv_pad * H        # kv bf16 in
                            + 2 * 2 * H * H + 2 * 4 * H
                            + 2 * 2 * B * skv_pad * H)),  # K,V bf16 out
    )(kv, wk_t, bk, wv_t, bv)

    # ---- Stage 2: attention (flash-style over the kv axis) ------------------
    hs_map = lambda b, qi, ki: (b, qi, 0)
    w_map3 = lambda b, qi, ki: (0, 0)
    kvb_map = lambda b, qi, ki: (b, ki, 0)

    in_specs = [
        pl.BlockSpec((None, tq, H), hs_map),     # hidden_states tile (f32)
        pl.BlockSpec((H, H), w_map3),            # Wq^T (scaled, bf16)
        pl.BlockSpec((1, H), w_map3),            # bq (scaled, f32)
        pl.BlockSpec((None, tk, H), kvb_map),    # K tile (bf16)
        pl.BlockSpec((None, tk, H), kvb_map),    # V tile (bf16)
        pl.BlockSpec((1, H), w_map3),            # LayerNorm gamma
        pl.BlockSpec((1, H), w_map3),            # LayerNorm beta
    ]
    args = [hs, wq_t, bq, k_proj, v_proj, gamma, beta]

    mask_bytes = 0
    if use_mask:
        mask = attention_mask
        mask_key_only = (mask.shape[1] == 1)     # (B, 1, Skv) key-padding mask
        pad_q = 0 if mask_key_only else sq_pad - Sq
        mask = jnp.pad(mask, ((0, 0), (0, pad_q), (0, skv_pad - Skv)))
        mask = mask.astype(jnp.bfloat16)         # only a >0 test; halve DMA
        if mask_key_only:
            in_specs.append(pl.BlockSpec((None, 1, tk),
                                         lambda b, qi, ki: (b, 0, ki)))
            mask_bytes = 2 * B * skv_pad
        else:
            in_specs.append(pl.BlockSpec((None, tq, tk),
                                         lambda b, qi, ki: (b, qi, ki)))
            mask_bytes = 2 * B * sq_pad * skv_pad
        args.append(mask)

    kernel = functools.partial(
        _attention_kernel,
        use_mask=use_mask,
        add_original_input=add_original_input,
        ln_eps=ln_eps,
        skv_valid=Skv,
        tk=tk,
        mask_kv_tail=(not use_mask) and (skv_pad != Skv),
    )

    out = pl.pallas_call(
        kernel,
        out_shape=jax.ShapeDtypeStruct((B, sq_pad, H), jnp.float32),
        grid_spec=pltpu.PrefetchScalarGridSpec(
            num_scalar_prefetch=0,
            grid=(B, nq, nkv),
            in_specs=in_specs,
            out_specs=pl.BlockSpec((None, tq, H), hs_map),
            scratch_shapes=[
                pltpu.VMEM((tq, H), jnp.bfloat16),    # cached Q tile
                pltpu.VMEM((tq, 1), jnp.float32),     # running max m
                pltpu.VMEM((tq, 1), jnp.float32),     # running denom l
                pltpu.VMEM((tq, H), jnp.float32),     # output accumulator
            ]),
        compiler_params=pltpu.CompilerParams(
            dimension_semantics=("parallel", "parallel", "arbitrary"),
            vmem_limit_bytes=vmem_limit),
        cost_estimate=pl.CostEstimate(
            flops=2 * B * sq_pad * H * H + 4 * B * sq_pad * skv_pad * H,
            transcendentals=B * sq_pad * skv_pad,
            bytes_accessed=(4 * B * sq_pad * H           # hidden_states f32
                            + 2 * 2 * B * skv_pad * H    # K, V bf16
                            + 2 * H * H + 4 * 4 * H      # Wq + small vectors
                            + mask_bytes
                            + 4 * B * sq_pad * H)),      # output f32
    )(*args)

    if sq_pad != Sq:
        out = out[:, :Sq, :]
    return out


# ----------------------------------------------------------------------------
# Pure-JAX reference (mirrors the PyTorch forward exactly, all f32)
# ----------------------------------------------------------------------------
def cross_attention_reference(hidden_states, key_value_states, params,
                              attention_mask=None, add_original_input=False):
    H = hidden_states.shape[-1]
    q = hidden_states @ params["wq"].T + params["bq"]
    k = key_value_states @ params["wk"].T + params["bk"]
    v = key_value_states @ params["wv"].T + params["bv"]
    scores = jnp.einsum("bqh,bkh->bqk", q, k) / math.sqrt(H)
    if attention_mask is not None:
        scores = scores + (1.0 - attention_mask) * jnp.finfo(scores.dtype).min
    probs = jax.nn.softmax(scores, axis=-1)
    out = jnp.einsum("bqk,bkh->bqh", probs, v)
    if add_original_input:
        x = hidden_states + out
        mean = jnp.mean(x, axis=-1, keepdims=True)
        var = jnp.mean((x - mean) ** 2, axis=-1, keepdims=True)
        x = (x - mean) / jnp.sqrt(var + 1e-5)
        return x * params["gamma"] + params["beta"]
    return out


def init_params(key, hidden_size):
    ks = jax.random.split(key, 6)
    bound = 1.0 / math.sqrt(hidden_size)
    u = lambda k, s: jax.random.uniform(k, s, jnp.float32, -bound, bound)
    return {
        "wq": u(ks[0], (hidden_size, hidden_size)),
        "bq": u(ks[1], (hidden_size,)),
        "wk": u(ks[2], (hidden_size, hidden_size)),
        "bk": u(ks[3], (hidden_size,)),
        "wv": u(ks[4], (hidden_size, hidden_size)),
        "bv": u(ks[5], (hidden_size,)),
        "gamma": jnp.ones((hidden_size,), jnp.float32),
        "beta": jnp.zeros((hidden_size,), jnp.float32),
    }


if __name__ == "__main__":
    key = jax.random.PRNGKey(0)
    k_hs, k_kv, k_mask, k_p = jax.random.split(key, 4)

    # Small shapes consistent with the module. NOTE: H=32 compiles (full-dim
    # blocks) but real deployments should pad H to a multiple of 128.
    B, Sq, Skv, H = 2, 8, 8, 32
    hidden_states = jax.random.normal(k_hs, (B, Sq, H), jnp.float32)
    key_value_states = jax.random.normal(k_kv, (B, Skv, H), jnp.float32)
    attention_mask = (jax.random.uniform(k_mask, (B, Sq, Skv)) > 0.3).astype(jnp.float32)
    params = init_params(k_p, H)

    # Tolerance is loosened vs pure-f32 because matmul inputs are rounded to
    # bf16 (accumulation stays f32) and the softmax denom uses approx recip.
    tol = dict(atol=5e-2, rtol=5e-2)

    # Case 1: default forward path (no mask, no residual/LayerNorm).
    out1 = jax.block_until_ready(
        cross_attention(hidden_states, key_value_states, params))
    ref1 = cross_attention_reference(hidden_states, key_value_states, params)
    assert jnp.allclose(out1, ref1, **tol), "mismatch (no mask)"

    # Case 2: mask + residual + LayerNorm.
    out2 = jax.block_until_ready(
        cross_attention(hidden_states, key_value_states, params,
                        attention_mask=attention_mask, add_original_input=True))
    ref2 = cross_attention_reference(hidden_states, key_value_states, params,
                                     attention_mask=attention_mask,
                                     add_original_input=True)
    assert jnp.allclose(out2, ref2, **tol), "mismatch (mask + LN)"

    # Case 3: non-divisible Sq/Skv with forced small tiles — exercises the
    # online-softmax kv loop, q-tile padding and the padded-key tail mask.
    Sq3, Skv3 = 24, 20
    hs3 = jax.random.normal(jax.random.PRNGKey(1), (B, Sq3, H), jnp.float32)
    kv3 = jax.random.normal(jax.random.PRNGKey(2), (B, Skv3, H), jnp.float32)
    out3 = jax.block_until_ready(
        cross_attention(hs3, kv3, params, tq_max=16, tk_max=16))
    ref3 = cross_attention_reference(hs3, kv3, params)
    assert jnp.allclose(out3, ref3, **tol), "mismatch (padded/tiled)"

    # Case 4: mask + residual + LayerNorm with padded/tiled q dimension.
    mask4 = (jax.random.uniform(jax.random.PRNGKey(3), (B, Sq3, Skv3)) > 0.3
             ).astype(jnp.float32)
    out4 = jax.block_until_ready(
        cross_attention(hs3, kv3, params, attention_mask=mask4,
                        add_original_input=True, tq_max=16, tk_max=16))
    ref4 = cross_attention_reference(hs3, kv3, params, attention_mask=mask4,
                                     add_original_input=True)
    assert jnp.allclose(out4, ref4, **tol), "mismatch (padded mask + LN)"

    print("KERNEL_OK")
</pallas_src>

<mosaic_0001>
module attributes {stable_mosaic.version = 11 : i64} {
  func.func @_kv_projection_kernel(%arg0: i32, %arg1: i32, %arg2: memref<1x8x32xbf16, #tpu.memory_space<vmem>>, %arg3: memref<32x32xbf16, #tpu.memory_space<vmem>>, %arg4: memref<1x32xf32, #tpu.memory_space<vmem>>, %arg5: memref<32x32xbf16, #tpu.memory_space<vmem>>, %arg6: memref<1x32xf32, #tpu.memory_space<vmem>>, %arg7: memref<1x8x32xbf16, #tpu.memory_space<vmem>>, %arg8: memref<1x8x32xbf16, #tpu.memory_space<vmem>>) attributes {dimension_semantics = [#tpu.dimension_semantics<parallel>, #tpu.dimension_semantics<parallel>], iteration_bounds = array<i64: 2, 1>, scalar_prefetch = 0 : i64, scratch_operands = 0 : i64, tpu.core_type = #tpu.core_type<tc>, window_params = [{transform_indices = @transform_0, window_bounds = array<i64: 1, 8, 32>}, {pipeline_mode = #tpu.pipeline_mode<synchronous>, transform_indices = @transform_1, window_bounds = array<i64: 32, 32>}, {pipeline_mode = #tpu.pipeline_mode<synchronous>, transform_indices = @transform_2, window_bounds = array<i64: 1, 32>}, {pipeline_mode = #tpu.pipeline_mode<synchronous>, transform_indices = @transform_3, window_bounds = array<i64: 32, 32>}, {pipeline_mode = #tpu.pipeline_mode<synchronous>, transform_indices = @transform_4, window_bounds = array<i64: 1, 32>}, {transform_indices = @transform_5, window_bounds = array<i64: 1, 8, 32>}, {transform_indices = @transform_6, window_bounds = array<i64: 1, 8, 32>}]} {
    %c0 = arith.constant 0 : index
    %c0_0 = arith.constant 0 : index
    %c0_1 = arith.constant 0 : index
    %0 = vector.load %arg2[%c0, %c0_0, %c0_1] : memref<1x8x32xbf16, #tpu.memory_space<vmem>>, vector<1x8x32xbf16>
    %1 = vector.shape_cast %0 : vector<1x8x32xbf16> to vector<8x32xbf16>
    %c0_2 = arith.constant 0 : index
    %c0_3 = arith.constant 0 : index
    %2 = vector.load %arg3[%c0_2, %c0_3] : memref<32x32xbf16, #tpu.memory_space<vmem>>, vector<32x32xbf16>
    %cst = arith.constant dense<0.000000e+00> : vector<8x32xf32>
    %3 = tpu.matmul %1, %2, %cst {dimension_numbers = #tpu.dot_dimension_numbers<[1], [0], [0], [1], [0, 0, 1, 1], [], []>} : vector<8x32xbf16>, vector<32x32xbf16>, vector<8x32xf32> -> vector<8x32xf32>
    %c0_4 = arith.constant 0 : index
    %c0_5 = arith.constant 0 : index
    %4 = vector.load %arg4[%c0_4, %c0_5] : memref<1x32xf32, #tpu.memory_space<vmem>>, vector<1x32xf32>
    %5 = vector.broadcast %4 : vector<1x32xf32> to vector<8x32xf32>
    %6 = arith.addf %3, %5 : vector<8x32xf32>
    %c0_6 = arith.constant 0 : index
    %c0_7 = arith.constant 0 : index
    %7 = vector.load %arg5[%c0_6, %c0_7] : memref<32x32xbf16, #tpu.memory_space<vmem>>, vector<32x32xbf16>
    %cst_8 = arith.constant dense<0.000000e+00> : vector<8x32xf32>
    %8 = tpu.matmul %1, %7, %cst_8 {dimension_numbers = #tpu.dot_dimension_numbers<[1], [0], [0], [1], [0, 0, 1, 1], [], []>} : vector<8x32xbf16>, vector<32x32xbf16>, vector<8x32xf32> -> vector<8x32xf32>
    %c0_9 = arith.constant 0 : index
    %c0_10 = arith.constant 0 : index
    %9 = vector.load %arg6[%c0_9, %c0_10] : memref<1x32xf32, #tpu.memory_space<vmem>>, vector<1x32xf32>
    %10 = vector.broadcast %9 : vector<1x32xf32> to vector<8x32xf32>
    %11 = arith.addf %8, %10 : vector<8x32xf32>
    %12 = arith.truncf %6 : vector<8x32xf32> to vector<8x32xbf16>
    %c0_11 = arith.constant 0 : index
    %c0_12 = arith.constant 0 : index
    %c0_13 = arith.constant 0 : index
    %13 = vector.load %arg7[%c0_11, %c0_12, %c0_13] : memref<1x8x32xbf16, #tpu.memory_space<vmem>>, vector<1x8x32xbf16>
    %14 = vector.shape_cast %13 : vector<1x8x32xbf16> to vector<8x32xbf16>
    %15 = vector.shape_cast %12 : vector<8x32xbf16> to vector<1x8x32xbf16>
    tpu.vector_store %arg7[%c0_11, %c0_12, %c0_13], %15 {strides = array<i32>} : memref<1x8x32xbf16, #tpu.memory_space<vmem>>, vector<1x8x32xbf16>,
    %16 = arith.truncf %11 : vector<8x32xf32> to vector<8x32xbf16>
    %c0_14 = arith.constant 0 : index
    %c0_15 = arith.constant 0 : index
    %c0_16 = arith.constant 0 : index
    %17 = vector.load %arg8[%c0_14, %c0_15, %c0_16] : memref<1x8x32xbf16, #tpu.memory_space<vmem>>, vector<1x8x32xbf16>
    %18 = vector.shape_cast %17 : vector<1x8x32xbf16> to vector<8x32xbf16>
    %19 = vector.shape_cast %16 : vector<8x32xbf16> to vector<1x8x32xbf16>
    tpu.vector_store %arg8[%c0_14, %c0_15, %c0_16], %19 {strides = array<i32>} : memref<1x8x32xbf16, #tpu.memory_space<vmem>>, vector<1x8x32xbf16>,
    return
  }
  func.func @transform_0(%arg0: i32, %arg1: i32) -> (i32, i32, i32) {
    %c0_i32 = arith.constant 0 : i32
    %c0_i32_0 = arith.constant 0 : i32
    return %arg0, %arg1, %c0_i32 : i32, i32, i32
  }
  func.func @transform_1(%arg0: i32, %arg1: i32) -> (i32, i32) {
    %c0_i32 = arith.constant 0 : i32
    %c0_i32_0 = arith.constant 0 : i32
    %c0_i32_1 = arith.constant 0 : i32
    return %c0_i32, %c0_i32_0 : i32, i32
  }
  func.func @transform_2(%arg0: i32, %arg1: i32) -> (i32, i32) {
    %c0_i32 = arith.constant 0 : i32
    %c0_i32_0 = arith.constant 0 : i32
    %c0_i32_1 = arith.constant 0 : i32
    return %c0_i32, %c0_i32_0 : i32, i32
  }
  func.func @transform_3(%arg0: i32, %arg1: i32) -> (i32, i32) {
    %c0_i32 = arith.constant 0 : i32
    %c0_i32_0 = arith.constant 0 : i32
    %c0_i32_1 = arith.constant 0 : i32
    return %c0_i32, %c0_i32_0 : i32, i32
  }
  func.func @transform_4(%arg0: i32, %arg1: i32) -> (i32, i32) {
    %c0_i32 = arith.constant 0 : i32
    %c0_i32_0 = arith.constant 0 : i32
    %c0_i32_1 = arith.constant 0 : i32
    return %c0_i32, %c0_i32_0 : i32, i32
  }
  func.func @transform_5(%arg0: i32, %arg1: i32) -> (i32, i32, i32) {
    %c0_i32 = arith.constant 0 : i32
    %c0_i32_0 = arith.constant 0 : i32
    return %arg0, %arg1, %c0_i32 : i32, i32, i32
  }
  func.func @transform_6(%arg0: i32, %arg1: i32) -> (i32, i32, i32) {
    %c0_i32 = arith.constant 0 : i32
    %c0_i32_0 = arith.constant 0 : i32
    return %arg0, %arg1, %c0_i32 : i32, i32, i32
  }
}

</mosaic_0001>

<bundles_post_ra>
// kernel: tpu_custom_call.1
= control target key start
LH: loop header
LB: loop body
LE: loop exit
PB: predicated region body
PF: predicated region fallthrough
CT: control target
= control target key end

     0   :  { %s1490_s0 = inlined_call_operand.hbm [shape: bf16[2,8,32], index: 0, kind: input, shape index: {}]   ;;  %s1491_s1 = inlined_call_operand.hbm [shape: bf16[32,32], index: 1, kind: input, shape index: {}]   ;;  %s1492_s2 = inlined_call_operand.hbm [shape: f32[1,32], index: 2, kind: input, shape index: {}]   ;;  %s1493_s3 = inlined_call_operand.hbm [shape: bf16[32,32], index: 3, kind: input, shape index: {}]   ;;  %s1494_s4 = inlined_call_operand.hbm [shape: f32[1,32], index: 4, kind: input, shape index: {}]   ;;  %s1495_s5 = inlined_call_operand.hbm [shape: bf16[2,8,32], index: 5, kind: output, shape index: {0}]   ;;  %s1496_s6 = inlined_call_operand.hbm [shape: bf16[2,8,32], index: 6, kind: output, shape index: {1}]  }
   0x1   :  { %1502 = sst [smem:[#allocation19_spill]] %s1491_s1 }
   0x2   :  { %12 = vsyncpa [#allocation3], 0 }
   0x3   :  { %14 = vsyncpa [#allocation3 + $0x1], 0 }
   0x4   :  { %15 = vsyncpa [#allocation6], 0 }
   0x5   :  { %16 = vsyncpa [#allocation9], 0 }
   0x6   :  { %17 = vsyncpa [#allocation4], 0 }
   0x7   :  { %19 = vsyncpa [#allocation4 + $0x1], 0 }
   0x8   :  { %20 = vsyncpa [#allocation13], 0 }
   0x9   :  { %22 = vsyncpa [#allocation13 + $0x1], 0  ;;  %s1155_s21 = smov 0   ;;  %s1157_s22 = smov 0  }
   0xa   :  { %s1159_s23 = smov 0   ;;  %s1161_s24 = smov 0  }
   0xb   :  { %s1163_s25 = smov 0   ;;  %s1165_s26 = smov 0  }
   0xc LB: > { %s1497_s27 = sadd.s32 4294967295, %s1107_s26   ;;  %p675_p0 = scmp.ge.s32.totalorder %s1107_s26, 1  ;;  %s1107_s26 = sphi %s1165_s26, %s28_s26   ;;  %s1103_s25 = sphi %s1163_s25, %s1524_s25   ;;  %s1099_s24 = sphi %s1161_s24, %s1523_s24   ;;  %s1095_s23 = sphi %s1159_s23, %s1522_s23   ;;  %s1091_s22 = sphi %s1157_s22, %s1521_s22   ;;  %s1087_s21 = sphi %s1155_s21, %s1520_s21  }
   0xd   : > { %p1189_p1 = scmp.eq.s32.totalorder %s1497_s27, 0  ;;  %p213_p2 = scmp.lt.s32.totalorder %s1107_s26, 3 }
   0xe   : > { %s1109_s30 = smov [#allocation5]   ;;  %s1110_s9 = smov [#allocation8]  }
   0xf   : > { %s1503_s28 = scalar_select %p1189_p1, 1, 0 }
  0x10   : > { %p1194_p3 = pnand %p675_p0, %p213_p2  ;;  %s225_s7 = sshll.u32 %s1109_s30, 4  ;;  %s1198_s7 = int_to_ptr.vmem [resolvable:$true] %s225_s7 }
  0x11   : > { %s249_s10 = sshll.u32 %s1110_s9, 4  ;;  %s1111_s11 = smov [#allocation7]   ;;  %s1209_s10 = int_to_ptr.vmem [resolvable:$true] %s249_s10 }
  0x12   : > { %s1504_s29 = scalar_select %p1194_p3, 1, 0 }
  0x13   : > { %p749_p4 = pneg %p1194_p3  ;;  %s1211_s12 = sshll.u32 %s1111_s11, 4  ;;  %s240_s12 = int_to_ptr.vmem [resolvable:$true] %s1211_s12 }
  0x14   : > { %s1506_s1 = sld [smem:[#allocation19_spill]] }
  0x15   : > { %p1205_p6 = pnand %p749_p4, %p1189_p1 }
  0x17   : > { %p1221_p8 = pneg %p1205_p6 }
  0x1a   : > { %s843_s15 = scalar_lea.hbm %s1506_s1, 256 }
  0x1b   : > { %p844_p7 = scmp.ne.s32.totalorder %s1506_s1, %s843_s15  ;;  %p850_p11 = scmp.lt.u32.totalorder %s843_s15, %s1506_s1 }
  0x1d   : > { %p846_p9 = pnand %p1221_p8, %p844_p7 }
  0x1f   : > { %p847_p10 = pneg %p846_p9 }
  0x21   : > { %p852_p12 = pnand %p850_p11, %p847_p10 }
  0x23   : > { %855 = shalt.err (!%p852_p12)
}
  0x24   : > { %s856_s30 = scalar_lea.vmem %s1198_s7, 256  ;;  %p864_p4 = scmp.lt.s32.totalorder %s1198_s7, %s1198_s7 }
  0x25   : > { %p857_p13 = scmp.ne.s32.totalorder %s1198_s7, %s856_s30  ;;  %p865_p5 = scmp.lt.s32.totalorder %s856_s30, %s856_s30 }
  0x27   : > { %p859_p0 = pnand %p857_p13, %p1221_p8  ;;  %p866_p7 = por %p865_p5, %p864_p4 }
  0x29   : > { %p860_p2 = pneg %p859_p0 }
  0x2b   : > { %p867_p9 = pnand %p866_p7, %p860_p2 }
  0x2d   : > { %870 = shalt.err (!%p867_p9)
}
  0x2e   : > { %s1112_s9 = smov 64   ;;  %s1113_s11 = smov 4  }
  0x2f   : > { %752 = dma.hbm_to_vmem [thread:$0]  (!%p1205_p6), %s1506_s1, 256, %s1198_s7, [#allocation6], %s1112_s9, %s1112_s9, %s1113_s11  }
  0x30   : > { %s871_s17 = scalar_lea.hbm %s1493_s3, 256 }
  0x31   : > { %p872_p5 = scmp.ne.s32.totalorder %s1493_s3, %s871_s17  ;;  %p878_p12 = scmp.lt.u32.totalorder %s871_s17, %s1493_s3 }
  0x33   : > { %p874_p10 = pnand %p872_p5, %p1221_p8 }
  0x35   : > { %p875_p11 = pneg %p874_p10 }
  0x37   : > { %p880_p13 = pnand %p878_p12, %p875_p11 }
  0x39   : > { %883 = shalt.err (!%p880_p13)
}
  0x3a   : > { %s884_s7 = scalar_lea.vmem %s1209_s10, 256  ;;  %p892_p7 = scmp.lt.s32.totalorder %s1209_s10, %s1209_s10 }
  0x3b   : > { %p885_p0 = scmp.ne.s32.totalorder %s1209_s10, %s884_s7  ;;  %p893_p9 = scmp.lt.s32.totalorder %s884_s7, %s884_s7 }
  0x3d   : > { %p887_p2 = pnand %p885_p0, %p1221_p8  ;;  %p894_p5 = por %p893_p9, %p892_p7 }
  0x3f   : > { %p888_p4 = pneg %p887_p2 }
  0x41   : > { %p895_p10 = pnand %p894_p5, %p888_p4 }
  0x43   : > { %898 = shalt.err (!%p895_p10)
}
  0x44   : > { %758 = dma.hbm_to_vmem [thread:$0]  (!%p1205_p6), %s1493_s3, 256, %s1209_s10, [#allocation9], %s1112_s9, %s1112_s9, %s1113_s11  }
  0x45   : > { %s899_s16 = scalar_lea.hbm %s1492_s2, 16 }
  0x46   : > { %p900_p11 = scmp.ne.s32.totalorder %s1492_s2, %s899_s16  ;;  %p906_p0 = scmp.lt.u32.totalorder %s899_s16, %s1492_s2 }
  0x48   : > { %p902_p12 = pnand %p900_p11, %p1221_p8 }
  0x4a   : > { %p903_p13 = pneg %p902_p12 }
  0x4c   : > { %p908_p2 = pnand %p906_p0, %p903_p13 }
  0x4e   : > { %911 = shalt.err (!%p908_p2)
}
  0x4f   : > { %s912_s7 = scalar_lea.vmem %s240_s12, 16  ;;  %s919_s10 = scalar_lea.vmem %s240_s12, 32 }
  0x50   : > { %p913_p4 = scmp.ne.s32.totalorder %s240_s12, %s912_s7  ;;  %p920_p5 = scmp.lt.s32.totalorder %s240_s12, %s240_s12 }
  0x51   : > { %p921_p10 = scmp.lt.s32.totalorder %s919_s10, %s912_s7 }
  0x52   : > { %p915_p7 = pnand %p913_p4, %p1221_p8 }
  0x53   : > { %p922_p3 = por %p921_p10, %p920_p5 }
  0x54   : > { %p916_p9 = pneg %p915_p7 }
  0x56   : > { %p923_p1 = pnand %p922_p3, %p916_p9 }
  0x58   : > { %926 = shalt.err (!%p923_p1)
}
  0x59   : > { %755 = dma.hbm_to_vmem [thread:$0]  (!%p1205_p6), %s1492_s2, 16, %s240_s12, [#allocation6]  }
  0x5a   : > { %s1114_s27 = smov [#allocation10]   ;;  %s927_s16 = scalar_lea.hbm %s1494_s4, 16 }
  0x5b   : > { %s263_s13 = sshll.u32 %s1114_s27, 4  ;;  %p928_p11 = scmp.ne.s32.totalorder %s1494_s4, %s927_s16  ;;  %s264_s13 = int_to_ptr.vmem [resolvable:$true] %s263_s13 }
  0x5c   : > { %p934_p12 = scmp.lt.u32.totalorder %s927_s16, %s1494_s4 }
  0x5d   : > { %p930_p1 = pnand %p928_p11, %p1221_p8 }
  0x5f   : > { %p931_p3 = pneg %p930_p1 }
  0x61   : > { %p936_p13 = pnand %p934_p12, %p931_p3 }
  0x63   : > { %939 = shalt.err (!%p936_p13)
}
  0x64   : > { %s940_s12 = scalar_lea.vmem %s264_s13, 16  ;;  %s947_s7 = scalar_lea.vmem %s264_s13, 32 }
  0x65   : > { %p941_p0 = scmp.ne.s32.totalorder %s264_s13, %s940_s12  ;;  %p948_p7 = scmp.lt.s32.totalorder %s264_s13, %s264_s13 }
  0x66   : > { %p949_p9 = scmp.lt.s32.totalorder %s947_s7, %s940_s12 }
  0x67   : > { %p943_p2 = pnand %p941_p0, %p1221_p8 }
  0x68   : > { %p950_p5 = por %p949_p9, %p948_p7 }
  0x69   : > { %p944_p4 = pneg %p943_p2 }
  0x6b   : > { %p951_p10 = pnand %p950_p5, %p944_p4 }
  0x6d   : > { %954 = shalt.err (!%p951_p10)
}
  0x6e   : > { %761 = dma.hbm_to_vmem [thread:$0]  (!%p1205_p6), %s1494_s4, 16, %s264_s13, [#allocation9]  }
  0x6f   : > { %s674_s18 = sadd.s32 4294967294, %s1107_s26   ;;  %s40_s11 = sadd.s32 1, %s1103_s25 }
  0x70   : > { %p42_p8 = scmp.ge.s32.totalorder %s40_s11, 2  ;;  %s49_s8 = sadd.s32 1, %s1095_s23 }
  0x71   : > { %p56_p11 = scmp.ne.s32.totalorder %s1095_s23, %s1091_s22  ;;  %p57_p1 = scmp.eq.s32.totalorder %s1107_s26, 0 }
  0x72   : > { %s1526_s11 = smov (%p42_p8, %s40_s11), 0  ;;  %p62_p12 = scmp.ne.s32.totalorder %s1091_s22, %s1087_s21 }
  0x73   : > { %p1310_p3 = por %p57_p1, %p56_p11  ;;  %s44_s13 = ssub.s32 %s1103_s25, %s1526_s11 }
  0x74   : > { %s1509_s14 = sadd.s32 4294967295, %s1107_s26   ;;  %p47_p13 = scmp.eq.s32.totalorder %s44_s13, 0 }
  0x75   : > { %p172_p6 = scmp.eq.s32.totalorder %s1509_s14, 1  ;;  %p1510_p0 = scmp.ne.s32.totalorder %s1503_s28, 0 }
  0x76   : > { %p178_p7 = scmp.eq.s32.totalorder %s674_s18, 1  ;;  %p777_p5 = scmp.lt.s32.totalorder %s1107_s26, 2 }
  0x77   : > { %p1322_p2 = por %p1510_p0, %p62_p12  ;;  %p1326_p4 = por %p172_p6, %p56_p11 }
  0x78   : > { %s1331_s17 = scalar_select %p47_p13, %s1095_s23, %s49_s8  }
  0x79   : > { %s1512_s16 = scalar_select %p1326_p4, 1, 0 }
  0x7a   : > { %p1333_p9 = por %p178_p7, %p62_p12  ;;  %s274_s20 = sand.u32 1, %s1095_s23  }
  0x7b   : > { %s682_s30 = sshll.u32 %s1103_s25, 6  ;;  %s681_s12 = sshll.u32 %s274_s20, 2 }
  0x7c   : > { %s1513_s19 = scalar_select %p1333_p9, 1, 0 }
  0x7d   : > { %s1343_s9 = scalar_lea.hbm %s1490_s0, %s682_s30  ;;  %s278_s18 = scalar_lea.vmem [#allocation2], %s681_s12 }
  0x7e   : > { %s286_s8 = sshll.u32 %s278_s18, 4  ;;  %p1347_p10 = pnand %p777_p5, %p1310_p3  ;;  %s1351_s8 = int_to_ptr.vmem [resolvable:$true] %s286_s8 }
  0x7f   : > { %s275_s14 = scalar_lea.sflag [#allocation3], %s274_s20  ;;  %s955_s1 = scalar_lea.hbm %s1343_s9, 64 }
  0x80   : > { %p956_p8 = scmp.ne.s32.totalorder %s1343_s9, %s955_s1  ;;  %p957_p11 = pneg %p1347_p10 }
  0x81   : > { %s960_s27 = scalar_lea.hbm %s1490_s0, 128  ;;  %p961_p3 = scmp.lt.u32.totalorder %s1343_s9, %s1490_s0 }
  0x82   : > { %p958_p1 = pnand %p957_p11, %p956_p8  ;;  %p962_p6 = scmp.lt.u32.totalorder %s960_s27, %s955_s1 }
  0x83   : > { %p964_p0 = scmp.lt.u32.totalorder %s955_s1, %s1343_s9 }
  0x84   : > { %p959_p12 = pneg %p958_p1  ;;  %p963_p13 = por %p962_p6, %p961_p3 }
  0x86   : > { %p965_p7 = por %p964_p0, %p963_p13 }
  0x88   : > { %p966_p5 = pnand %p965_p7, %p959_p12 }
  0x8a   : > { %969 = shalt.err (!%p966_p5)
}
  0x8b   : > { %s970_s20 = scalar_lea.vmem %s1351_s8, 64  ;;  %s1115_s18 = smov [#allocation2]  }
  0x8c   : > { %p971_p8 = scmp.ne.s32.totalorder %s1351_s8, %s970_s20  ;;  %s975_s30 = sshll.u32 %s1115_s18, 4  ;;  %s976_s30 = int_to_ptr.vmem [resolvable:$false] %s975_s30 }
  0x8d   : > { %s977_s12 = scalar_lea.vmem %s976_s30, 128  ;;  %p978_p4 = scmp.lt.s32.totalorder %s1351_s8, %s976_s30 }
  0x8e   : > { %p973_p1 = pnand %p971_p8, %p957_p11  ;;  %p979_p3 = scmp.lt.s32.totalorder %s977_s12, %s970_s20 }
  0x90   : > { %p974_p9 = pneg %p973_p1  ;;  %p980_p6 = por %p979_p3, %p978_p4 }
  0x92   : > { %p981_p13 = pnand %p980_p6, %p974_p9 }
  0x94   : > { %984 = shalt.err (!%p981_p13)
}
  0x95   : > { %765 = dma.hbm_to_vmem [thread:$0]  (!%p1347_p10), %s1343_s9, 64, %s1351_s8, %s275_s14  }
  0x96   : > { %p1515_p12 = scmp.ne.s32.totalorder %s1504_s29, 0 }
  0x97   : > { %s1381_s1 = sand.u32 (!%p1515_p12), 1, %s1091_s22  }
  0x98   : > { %295 = sbr.rel (%p1515_p12) target bundleno = 428 (0x1ac), region = 40  ;;  %s1384_s27 = sshll.u32 (!%p1515_p12), %s1381_s1, 2 }
  0x99   : > { %s298_s7 = scalar_lea.sflag (!%p1515_p12), [#allocation3], %s1381_s1  ;;  %s301_s10 = scalar_lea.vmem (!%p1515_p12), [#allocation2], %s1384_s27 }
  0x9f   : > { %1066 = dma.done.wait (%p1322_p2), %s298_s7, 64  }
  0xa0   : > { %1068 = vsyncadd (%p1322_p2), %s298_s7, 4294967232  ;;  %p1516_p4 = scmp.ne.s32.totalorder %s1503_s28, 0 }
  0xa2   : > { %1070 = dma.done.wait (%p1516_p4), [#allocation6], 272  }
  0xa3   : > { %1072 = vsyncadd (%p1516_p4), [#allocation6], 4294967024 }
  0xa4   : > { %1074 = dma.done.wait (%p1516_p4), [#allocation9], 272  }
  0xa5   : > { %1076 = vsyncadd (%p1516_p4), [#allocation9], 4294967024  ;;  %v1116_v0 = vmov 0.0   ;;  %vm1117_vm0 = vmmov 0   ;;  %v839_v1 = vld [vmem:[#allocation5] sm:$0xff]   ;;  %v840_v2 = vld [vmem:[#allocation8] sm:$0xff]  }
  0xa6   : > { %711 = vmatprep.subr.bf16.mxu0 %v1116_v0  ;;  %719 = vmatprep.subr.bf16.mxu1 %v1116_v0  ;;  %v841_v3 = vld [vmem:[#allocation5 + $0x8] sm:$0xff]   ;;  %v842_v4 = vld [vmem:[#allocation8 + $0x8] sm:$0xff]   ;;  %vm376_vm1 = vcmask 261120   ;;  %v691_v6 = vld [vmem:[#allocation7] ss:$0 sm:$0xff]  ;;  %s701_s28 = sshll.u32 %s1099_s24, 6 }
  0xa7   : > { %715 = vmatprep.mubr.msk.bf16.mxu0 %vm1117_vm0, %v1116_v0  ;;  %723 = vmatprep.mubr.msk.bf16.mxu1 %vm1117_vm0, %v1116_v0  ;;  %v352_v5 = vld [vmem:[%s301_s10] sm:$0xf]  ;;  %v695_v7 = vld [vmem:[#allocation10] ss:$0 sm:$0xff]  ;;  %s343_s29 = scalar_lea.vmem [#allocation11], %s1384_s27  ;;  %s350_s9 = scalar_lea.vmem [#allocation12], %s1384_s27 }
  0xa8   : > { %712 = vmatpush3.bf16.msra.mxu0 %v839_v1  ;;  %720 = vmatpush3.bf16.msra.mxu1 %v840_v2  ;;  %s508_s15 = sshll.u32 %s343_s29, 4  ;;  %s522_s8 = sshll.u32 %s350_s9, 4  ;;  %vm484_vm2 = vcmask 257024   ;;  %s1410_s15 = int_to_ptr.vmem [resolvable:$true] %s508_s15  ;;  %s1417_s8 = int_to_ptr.vmem [resolvable:$true] %s522_s8 }
  0xa9   : > { %713 = vmatprep.subr.bf16.mxu0 %v1116_v0  ;;  %721 = vmatprep.subr.bf16.mxu1 %v1116_v0  ;;  %s1408_s20 = scalar_lea.hbm %s1495_s5, %s701_s28  ;;  %s1415_s30 = scalar_lea.hbm %s1496_s6, %s701_s28 }
  0xaa   : > { %s489_s12 = scalar_lea.sflag [#allocation4], %s1381_s1  ;;  %s985_s7 = scalar_lea.vmem %s1410_s15, 64 }
  0xab   : > { %p986_p2 = scmp.ne.s32.totalorder %s1410_s15, %s985_s7  ;;  %p1517_p9 = scmp.ne.s32.totalorder %s1512_s16, 0 }
  0xac   : > { %714 = vmatpush3.bf16.msra.mxu0 %v841_v3  ;;  %722 = vmatpush3.bf16.msra.mxu1 %v842_v4  ;;  %s1118_s10 = smov [#allocation11]  }
  0xad   : > { %p987_p10 = pnand %p986_p2, %p1517_p9  ;;  %s989_s13 = sshll.u32 %s1118_s10, 4  ;;  %s990_s13 = int_to_ptr.vmem [resolvable:$false] %s989_s13 }
  0xae   : > { %s991_s14 = scalar_lea.vmem %s990_s13, 128  ;;  %p992_p0 = scmp.lt.s32.totalorder %s1410_s15, %s990_s13 }
  0xaf   : > { %716 = vmatmul.mubr.msk.bf16.vlgmr.msra.gmra.mrb[0].mxu0 %vm376_vm1, %v352_v5  ;;  %724 = vmatmul.mubr.msk.bf16.vlgmr.msra.gmra.mrb[0].mxu1 %vm376_vm1, %v352_v5  ;;  %p988_p11 = pneg %p987_p10  ;;  %p993_p7 = scmp.lt.s32.totalorder %s991_s14, %s985_s7 }
  0xb1   : > { %p994_p5 = por %p993_p7, %p992_p0 }
  0xb3   : > { %p995_p8 = pnand %p994_p5, %p988_p11 }
 0x182   : > { %v414_v8 = vpop.f32.mrb[0].mxu0  ;;  %v477_v10 = vpop.f32.mrb[0].mxu1 }
 0x183   : > { %v415_v9 = vadd.f32 %v691_v6, %v414_v8  ;;  %v717_v11 = vpop.f32.mrb[1].mxu0  ;;  %v478_v12 = vadd.f32 %v695_v7, %v477_v10  ;;  %v725_v13 = vpop.f32.mrb[1].mxu1 }
 0x184   : > { %v417_v14 = vpop.f32.mrb[2].mxu0  ;;  %v480_v16 = vpop.f32.mrb[2].mxu1 }
 0x185   : > { %v483_v15 = vpack.c.bf16 %v415_v9, %v415_v9  ;;  %v718_v17 = vpop.f32.mrb[3].mxu0  ;;  %v486_v18 = vpack.c.bf16 %v478_v12, %v478_v12  ;;  %v726_v19 = vpop.f32.mrb[3].mxu1 }
 0x187   : > { %485 = vst.msk [vmem:[%s343_s29] sm:$0xf] %vm484_vm2, %v483_v15 }
 0x188   : > { %998 = shalt.err (!%p995_p8)
}
 0x189   : > { %s999_s28 = scalar_lea.hbm %s1408_s20, 64  ;;  %s1003_s18 = scalar_lea.hbm %s1495_s5, 128 }
 0x18a   : > { %p1000_p1 = scmp.ne.s32.totalorder %s1408_s20, %s999_s28  ;;  %p1004_p13 = scmp.lt.u32.totalorder %s1408_s20, %s1495_s5 }
 0x18b   : > { %p1005_p12 = scmp.lt.u32.totalorder %s1003_s18, %s999_s28  ;;  %p1007_p2 = scmp.lt.u32.totalorder %s999_s28, %s1408_s20 }
 0x18c   : > { %p1001_p3 = pnand %p1000_p1, %p1517_p9 }
 0x18d   : > { %p1006_p4 = por %p1005_p12, %p1004_p13 }
 0x18e   : > { %p1002_p6 = pneg %p1001_p3 }
 0x18f   : > { %p1008_p10 = por %p1007_p2, %p1006_p4 }
 0x191   : > { %p1009_p11 = pnand %p1008_p10, %p1002_p6 }
 0x193   : > { %1012 = shalt.err (!%p1009_p11)
}
 0x194   : > { %745 = dma.vmem_to_hbm [thread:$0]  (%p1517_p9), %s1410_s15, 64, %s1408_s20, %s489_s12   ;;  %487 = vst.msk [vmem:[%s350_s9] sm:$0xf] %vm484_vm2, %v486_v18 }
 0x195   : > { %s494_s7 = scalar_lea.sflag [#allocation13], %s1381_s1  ;;  %s1013_s14 = scalar_lea.vmem %s1417_s8, 64 }
 0x196   : > { %p1014_p0 = scmp.ne.s32.totalorder %s1417_s8, %s1013_s14  ;;  %s1119_s28 = smov [#allocation12]  }
 0x197   : > { %s1017_s29 = sshll.u32 %s1119_s28, 4  ;;  %s1018_s29 = int_to_ptr.vmem [resolvable:$false] %s1017_s29 }
 0x198   : > { %p1015_p7 = pnand %p1014_p0, %p1517_p9  ;;  %s1019_s24 = scalar_lea.vmem %s1018_s29, 128 }
 0x199   : > { %p1020_p8 = scmp.lt.s32.totalorder %s1417_s8, %s1018_s29  ;;  %p1021_p1 = scmp.lt.s32.totalorder %s1019_s24, %s1013_s14 }
 0x19a   : > { %p1016_p5 = pneg %p1015_p7 }
 0x19b   : > { %p1022_p3 = por %p1021_p1, %p1020_p8 }
 0x19d   : > { %p1023_p6 = pnand %p1022_p3, %p1016_p5 }
 0x19f   : > { %1026 = shalt.err (!%p1023_p6)
}
 0x1a0   : > { %s1027_s1 = scalar_lea.hbm %s1415_s30, 64  ;;  %s1031_s9 = scalar_lea.hbm %s1496_s6, 128 }
 0x1a1   : > { %p1028_p13 = scmp.ne.s32.totalorder %s1415_s30, %s1027_s1  ;;  %p1032_p2 = scmp.lt.u32.totalorder %s1415_s30, %s1496_s6 }
 0x1a2   : > { %p1033_p10 = scmp.lt.u32.totalorder %s1031_s9, %s1027_s1  ;;  %p1035_p0 = scmp.lt.u32.totalorder %s1027_s1, %s1415_s30 }
 0x1a3   : > { %p1029_p12 = pnand %p1028_p13, %p1517_p9 }
 0x1a4   : > { %p1034_p11 = por %p1033_p10, %p1032_p2 }
 0x1a5   : > { %p1030_p4 = pneg %p1029_p12 }
 0x1a6   : > { %p1036_p7 = por %p1035_p0, %p1034_p11 }
 0x1a8   : > { %p1037_p5 = pnand %p1036_p7, %p1030_p4 }
 0x1aa   : > { %1040 = shalt.err (!%p1037_p5)
}
 0x1ab   : > { %746 = dma.vmem_to_hbm [thread:$0]  (%p1517_p9), %s1417_s8, 64, %s1415_s30, %s494_s7  }
 0x1ac PF: > { %s534_s18 = sand.u32 1, %s1087_s21   ;;  %p1518_p8 = scmp.ne.s32.totalorder %s1513_s19, 0 }
 0x1ad   : > { %p1519_p1 = scmp.ge.s32.totalorder %s1107_s26, 2  ;;  %s535_s10 = scalar_lea.sflag [#allocation4], %s534_s18 }
 0x1af   : > { %p767_p3 = pnand %p1519_p1, %p1518_p8 }
 0x1b1   : > { %1078 = dma.done.wait (!%p767_p3), %s535_s10, 64  }
 0x1b2   : > { %1080 = vsyncadd (!%p767_p3), %s535_s10, 4294967232  ;;  %s544_s13 = scalar_lea.sflag [#allocation13], %s534_s18 }
 0x1b3   : > { %1082 = dma.done.wait (!%p767_p3), %s544_s13, 64  }
 0x1b4   : > { %1084 = vsyncadd (!%p767_p3), %s544_s13, 4294967232  ;;  %s28_s26 = sadd.s32 1, %s1107_s26   ;;  %s1520_s21 = smov %s1091_s22 }
 0x1b5   : > { %p25_p6 = scmp.ge.s32.totalorder %s28_s26, 4   ;;  %s1521_s22 = smov %s1095_s23 }
 0x1b6   : > { %s1522_s23 = smov %s1331_s17  ;;  %s1523_s24 = smov %s1103_s25 }
 0x1b7   : > { %s1524_s25 = smov %s1526_s11  ;;  %27 = sbr.rel (!%p25_p6) target bundleno = 12 (0xc), region = 118 }
 0x1be   :  { %549 = vsyncpa [#allocation3], 1 }
 0x1bf   :  { %551 = vsyncpa [#allocation3 + $0x1], 1 }
 0x1c0   :  { %552 = vsyncpa [#allocation6], 1 }
 0x1c1   :  { %553 = vsyncpa [#allocation9], 1 }
 0x1c2   :  { %554 = vsyncpa [#allocation4], 1 }
 0x1c3   :  { %556 = vsyncpa [#allocation4 + $0x1], 1 }
 0x1c4   :  { %557 = vsyncpa [#allocation13], 1 }
 0x1c5   :  { %559 = vsyncpa [#allocation13 + $0x1], 1 }

</bundles_post_ra>
